<compile_context>
chip_gen: v7x
topology: tpu7x:2x2x1
jax: 0.10.0
libtpu: 0.0.40
codegen_flags: <defaults>
</compile_context>

<pallas_src>
import functools

import jax
import jax.numpy as jnp
from jax.experimental import pallas as pl
from jax.experimental.pallas import tpu as pltpu


def _round_up(x, m):
    return ((x + m - 1) // m) * m


def label_prior_kernel(u_ref, w1_ref, b1_ref, w2_ref, b2_ref,
                       wh_ref, bh_ref, out_ref):
    cd = w1_ref.dtype  # compute dtype of the matmul operands (f32 or bf16)

    u = u_ref[...].astype(cd)

    # main[0:2]: Linear(dim_u -> hidden) + LeakyReLU(0.2)
    h = jnp.dot(u, w1_ref[...], preferred_element_type=jnp.float32) + b1_ref[...]
    h = jnp.maximum(h, 0.2 * h)

    # main[2:4]: Linear(hidden -> hidden) + LeakyReLU(0.2)
    h = jnp.dot(h.astype(cd), w2_ref[...],
                preferred_element_type=jnp.float32) + b2_ref[...]
    h = jnp.maximum(h, 0.2 * h)

    # Fused heads: Linear(hidden -> 2*dim_z) == [mean | log_var]
    out_ref[...] = (jnp.dot(h.astype(cd), wh_ref[...],
                            preferred_element_type=jnp.float32)
                    + bh_ref[...]).astype(out_ref.dtype)


@functools.partial(jax.jit, static_argnames=("block_b", "compute_dtype"))
def label_prior_forward(u, params, *, block_b=128, compute_dtype=jnp.float32):
    """Fused MLP prior as a single batch-gridded Pallas kernel.

    Returns (mean, log_var), each (B, dim_z) float32.
    """
    B, dim_u = u.shape
    dim_z = params["wm"].shape[1]

    # Fuse the two heads into one lane-denser matmul on the host side.
    wh = jnp.concatenate([params["wm"], params["wv"]], axis=1)   # (hidden, 2*dim_z)
    bh = jnp.concatenate([params["bm"], params["bv"]], axis=1)   # (1, 2*dim_z)

    # Batch tile: multiple of 8 (sublane), capped at block_b (MXU-friendly 128).
    tb = min(block_b, _round_up(B, 8))
    b_pad = _round_up(B, tb)
    if b_pad != B:
        u = jnp.pad(u, ((0, b_pad - B), (0, 0)))

    cd = compute_dtype
    u_c = u.astype(cd)
    w1 = params["w1"].astype(cd)
    w2 = params["w2"].astype(cd)
    wh = wh.astype(cd)
    # Biases stay f32: they are added to the f32 accumulator.
    b1, b2 = params["b1"], params["b2"]

    grid = (pl.cdiv(b_pad, tb),)

    def resident_spec(arr):
        # Whole-array block, constant index_map -> loaded once, stays in VMEM.
        nd = arr.ndim
        return pl.BlockSpec(arr.shape, lambda i, _nd=nd: (0,) * _nd)

    out = pl.pallas_call(
        label_prior_kernel,
        out_shape=jax.ShapeDtypeStruct((b_pad, 2 * dim_z), jnp.float32),
        grid=grid,
        in_specs=[
            pl.BlockSpec((tb, dim_u), lambda i: (i, 0)),   # u: tiled over batch
            resident_spec(w1), resident_spec(b1),
            resident_spec(w2), resident_spec(b2),
            resident_spec(wh), resident_spec(bh),
        ],
        out_specs=pl.BlockSpec((tb, 2 * dim_z), lambda i: (i, 0)),
        compiler_params=pltpu.CompilerParams(
            dimension_semantics=("parallel",),   # shard batch steps across TCs (v7x)
        ),
    )(u_c, w1, b1, w2, b2, wh, bh)

    mean = out[:B, :dim_z]
    log_var = out[:B, dim_z:]
    return mean, log_var


def init_params(key, dim_z, dim_u, hidden_nodes):
    """Deterministic init mirroring nn.Linear's U(-1/sqrt(fan_in), 1/sqrt(fan_in))."""
    # TODO(synk): for production, pad hidden_nodes / 2*dim_z up to 128 lanes at
    # init time (zero columns) to get full-width MXU passes and unmasked stores.
    def linear(k, fan_in, fan_out):
        kw, kb = jax.random.split(k)
        bound = 1.0 / jnp.sqrt(fan_in)
        w = jax.random.uniform(kw, (fan_in, fan_out), jnp.float32, -bound, bound)
        b = jax.random.uniform(kb, (1, fan_out), jnp.float32, -bound, bound)
        return w, b

    k1, k2, k3, k4 = jax.random.split(key, 4)
    w1, b1 = linear(k1, dim_u, hidden_nodes)
    w2, b2 = linear(k2, hidden_nodes, hidden_nodes)
    wm, bm = linear(k3, hidden_nodes, dim_z)
    wv, bv = linear(k4, hidden_nodes, dim_z)
    return dict(w1=w1, b1=b1, w2=w2, b2=b2, wm=wm, bm=bm, wv=wv, bv=bv)


def reference_forward(u, p):
    """Pure-JAX reference for correctness checking."""
    h = jnp.dot(u, p["w1"]) + p["b1"]
    h = jnp.where(h >= 0, h, 0.2 * h)
    h = jnp.dot(h, p["w2"]) + p["b2"]
    h = jnp.where(h >= 0, h, 0.2 * h)
    return jnp.dot(h, p["wm"]) + p["bm"], jnp.dot(h, p["wv"]) + p["bv"]


if __name__ == "__main__":
    dim_z, dim_u, hidden_nodes = 8, 16, 32
    batch = 8

    key = jax.random.PRNGKey(0)
    k_params, k_input = jax.random.split(key)
    params = init_params(k_params, dim_z, dim_u, hidden_nodes)
    u = jax.random.normal(k_input, (batch, dim_u), jnp.float32)

    # f32 path (exact vs reference).
    mean, log_var = label_prior_forward(u, params)
    jax.block_until_ready((mean, log_var))

    mean_ref, log_var_ref = reference_forward(u, params)
    assert mean.shape == (batch, dim_z) and log_var.shape == (batch, dim_z)
    assert jnp.allclose(mean, mean_ref, atol=1e-5, rtol=1e-5)
    assert jnp.allclose(log_var, log_var_ref, atol=1e-5, rtol=1e-5)

    # bf16 fast path (v6e/v7x): looser tolerance, same semantics.
    mean_bf, log_var_bf = label_prior_forward(u, params,
                                              compute_dtype=jnp.bfloat16)
    jax.block_until_ready((mean_bf, log_var_bf))
    assert jnp.allclose(mean_bf, mean_ref, atol=3e-2, rtol=3e-2)
    assert jnp.allclose(log_var_bf, log_var_ref, atol=3e-2, rtol=3e-2)

    # Exercise the multi-step (gridded) path with a larger, non-tile-aligned batch.
    u_big = jax.random.normal(jax.random.PRNGKey(1), (300, dim_u), jnp.float32)
    mean_big, log_var_big = label_prior_forward(u_big, params)
    jax.block_until_ready((mean_big, log_var_big))
    mean_big_ref, log_var_big_ref = reference_forward(u_big, params)
    assert jnp.allclose(mean_big, mean_big_ref, atol=1e-5, rtol=1e-5)
    assert jnp.allclose(log_var_big, log_var_big_ref, atol=1e-5, rtol=1e-5)

    print("KERNEL_OK")
</pallas_src>

<mosaic_0001>
module attributes {stable_mosaic.version = 11 : i64} {
  func.func @label_prior_kernel(%arg0: i32, %arg1: memref<8x16xf32, #tpu.memory_space<vmem>>, %arg2: memref<16x32xf32, #tpu.memory_space<vmem>>, %arg3: memref<1x32xf32, #tpu.memory_space<vmem>>, %arg4: memref<32x32xf32, #tpu.memory_space<vmem>>, %arg5: memref<1x32xf32, #tpu.memory_space<vmem>>, %arg6: memref<32x16xf32, #tpu.memory_space<vmem>>, %arg7: memref<1x16xf32, #tpu.memory_space<vmem>>, %arg8: memref<8x16xf32, #tpu.memory_space<vmem>>) attributes {dimension_semantics = [#tpu.dimension_semantics<parallel>], iteration_bounds = array<i64: 1>, scalar_prefetch = 0 : i64, scratch_operands = 0 : i64, tpu.core_type = #tpu.core_type<tc>, window_params = [{transform_indices = @transform_0, window_bounds = array<i64: 8, 16>}, {pipeline_mode = #tpu.pipeline_mode<synchronous>, transform_indices = @transform_1, window_bounds = array<i64: 16, 32>}, {pipeline_mode = #tpu.pipeline_mode<synchronous>, transform_indices = @transform_2, window_bounds = array<i64: 1, 32>}, {pipeline_mode = #tpu.pipeline_mode<synchronous>, transform_indices = @transform_3, window_bounds = array<i64: 32, 32>}, {pipeline_mode = #tpu.pipeline_mode<synchronous>, transform_indices = @transform_4, window_bounds = array<i64: 1, 32>}, {pipeline_mode = #tpu.pipeline_mode<synchronous>, transform_indices = @transform_5, window_bounds = array<i64: 32, 16>}, {pipeline_mode = #tpu.pipeline_mode<synchronous>, transform_indices = @transform_6, window_bounds = array<i64: 1, 16>}, {transform_indices = @transform_7, window_bounds = array<i64: 8, 16>}]} {
    %c0 = arith.constant 0 : index
    %c0_0 = arith.constant 0 : index
    %0 = vector.load %arg1[%c0, %c0_0] : memref<8x16xf32, #tpu.memory_space<vmem>>, vector<8x16xf32>
    %c0_1 = arith.constant 0 : index
    %c0_2 = arith.constant 0 : index
    %1 = vector.load %arg2[%c0_1, %c0_2] : memref<16x32xf32, #tpu.memory_space<vmem>>, vector<16x32xf32>
    %cst = arith.constant dense<0.000000e+00> : vector<8x32xf32>
    %2 = tpu.matmul %0, %1, %cst {dimension_numbers = #tpu.dot_dimension_numbers<[1], [0], [0], [1], [0, 0, 1, 1], [], []>} : vector<8x16xf32>, vector<16x32xf32>, vector<8x32xf32> -> vector<8x32xf32>
    %c0_3 = arith.constant 0 : index
    %c0_4 = arith.constant 0 : index
    %3 = vector.load %arg3[%c0_3, %c0_4] : memref<1x32xf32, #tpu.memory_space<vmem>>, vector<1x32xf32>
    %4 = vector.broadcast %3 : vector<1x32xf32> to vector<8x32xf32>
    %5 = arith.addf %2, %4 : vector<8x32xf32>
    %cst_5 = arith.constant 2.000000e-01 : f32
    %6 = vector.broadcast %cst_5 : f32 to vector<8x32xf32>
    %7 = arith.mulf %6, %5 : vector<8x32xf32>
    %8 = arith.maximumf %5, %7 : vector<8x32xf32>
    %c0_6 = arith.constant 0 : index
    %c0_7 = arith.constant 0 : index
    %9 = vector.load %arg4[%c0_6, %c0_7] : memref<32x32xf32, #tpu.memory_space<vmem>>, vector<32x32xf32>
    %cst_8 = arith.constant dense<0.000000e+00> : vector<8x32xf32>
    %10 = tpu.matmul %8, %9, %cst_8 {dimension_numbers = #tpu.dot_dimension_numbers<[1], [0], [0], [1], [0, 0, 1, 1], [], []>} : vector<8x32xf32>, vector<32x32xf32>, vector<8x32xf32> -> vector<8x32xf32>
    %c0_9 = arith.constant 0 : index
    %c0_10 = arith.constant 0 : index
    %11 = vector.load %arg5[%c0_9, %c0_10] : memref<1x32xf32, #tpu.memory_space<vmem>>, vector<1x32xf32>
    %12 = vector.broadcast %11 : vector<1x32xf32> to vector<8x32xf32>
    %13 = arith.addf %10, %12 : vector<8x32xf32>
    %cst_11 = arith.constant 2.000000e-01 : f32
    %14 = vector.broadcast %cst_11 : f32 to vector<8x32xf32>
    %15 = arith.mulf %14, %13 : vector<8x32xf32>
    %16 = arith.maximumf %13, %15 : vector<8x32xf32>
    %c0_12 = arith.constant 0 : index
    %c0_13 = arith.constant 0 : index
    %17 = vector.load %arg6[%c0_12, %c0_13] : memref<32x16xf32, #tpu.memory_space<vmem>>, vector<32x16xf32>
    %cst_14 = arith.constant dense<0.000000e+00> : vector<8x16xf32>
    %18 = tpu.matmul %16, %17, %cst_14 {dimension_numbers = #tpu.dot_dimension_numbers<[1], [0], [0], [1], [0, 0, 1, 1], [], []>} : vector<8x32xf32>, vector<32x16xf32>, vector<8x16xf32> -> vector<8x16xf32>
    %c0_15 = arith.constant 0 : index
    %c0_16 = arith.constant 0 : index
    %19 = vector.load %arg7[%c0_15, %c0_16] : memref<1x16xf32, #tpu.memory_space<vmem>>, vector<1x16xf32>
    %20 = vector.broadcast %19 : vector<1x16xf32> to vector<8x16xf32>
    %21 = arith.addf %18, %20 : vector<8x16xf32>
    %c0_17 = arith.constant 0 : index
    %c0_18 = arith.constant 0 : index
    %22 = vector.load %arg8[%c0_17, %c0_18] : memref<8x16xf32, #tpu.memory_space<vmem>>, vector<8x16xf32>
    tpu.vector_store %arg8[%c0_17, %c0_18], %21 {strides = array<i32>} : memref<8x16xf32, #tpu.memory_space<vmem>>, vector<8x16xf32>,
    return
  }
  func.func @transform_0(%arg0: i32) -> (i32, i32) {
    %c0_i32 = arith.constant 0 : i32
    %c0_i32_0 = arith.constant 0 : i32
    return %arg0, %c0_i32 : i32, i32
  }
  func.func @transform_1(%arg0: i32) -> (i32, i32) {
    %c0_i32 = arith.constant 0 : i32
    %c0_i32_0 = arith.constant 0 : i32
    %c0_i32_1 = arith.constant 0 : i32
    return %c0_i32, %c0_i32_0 : i32, i32
  }
  func.func @transform_2(%arg0: i32) -> (i32, i32) {
    %c0_i32 = arith.constant 0 : i32
    %c0_i32_0 = arith.constant 0 : i32
    %c0_i32_1 = arith.constant 0 : i32
    return %c0_i32, %c0_i32_0 : i32, i32
  }
  func.func @transform_3(%arg0: i32) -> (i32, i32) {
    %c0_i32 = arith.constant 0 : i32
    %c0_i32_0 = arith.constant 0 : i32
    %c0_i32_1 = arith.constant 0 : i32
    return %c0_i32, %c0_i32_0 : i32, i32
  }
  func.func @transform_4(%arg0: i32) -> (i32, i32) {
    %c0_i32 = arith.constant 0 : i32
    %c0_i32_0 = arith.constant 0 : i32
    %c0_i32_1 = arith.constant 0 : i32
    return %c0_i32, %c0_i32_0 : i32, i32
  }
  func.func @transform_5(%arg0: i32) -> (i32, i32) {
    %c0_i32 = arith.constant 0 : i32
    %c0_i32_0 = arith.constant 0 : i32
    %c0_i32_1 = arith.constant 0 : i32
    return %c0_i32, %c0_i32_0 : i32, i32
  }
  func.func @transform_6(%arg0: i32) -> (i32, i32) {
    %c0_i32 = arith.constant 0 : i32
    %c0_i32_0 = arith.constant 0 : i32
    %c0_i32_1 = arith.constant 0 : i32
    return %c0_i32, %c0_i32_0 : i32, i32
  }
  func.func @transform_7(%arg0: i32) -> (i32, i32) {
    %c0_i32 = arith.constant 0 : i32
    %c0_i32_0 = arith.constant 0 : i32
    return %arg0, %c0_i32 : i32, i32
  }
}

</mosaic_0001>

<bundles_post_ra>
// kernel: label_prior_forward.1
= control target key start
LH: loop header
LB: loop body
LE: loop exit
PB: predicated region body
PF: predicated region fallthrough
CT: control target
= control target key end

     0   :  { %v354_v0 = vmov 0.0|0.0   ;;  %vm355_vm0 = vmmov 0   ;;  %v356_v3 = vmov 0.0   ;;  %vm36_vm1 = vcmask 130048   ;;  %s446_s1 = inlined_call_operand.vmem [shape: f32[16,32], index: 1, kind: input, shape index: {}]   ;;  %s447_s0 = inlined_call_operand.vmem [shape: f32[8,16], index: 0, kind: input, shape index: {}]   ;;  %s448_s3 = inlined_call_operand.vmem [shape: f32[32,32], index: 3, kind: input, shape index: {}]   ;;  %s449_s2 = inlined_call_operand.vmem [shape: f32[1,32], index: 2, kind: input, shape index: {}]   ;;  %s450_s5 = inlined_call_operand.vmem [shape: f32[32,16], index: 5, kind: input, shape index: {}]   ;;  %s451_s4 = inlined_call_operand.vmem [shape: f32[1,32], index: 4, kind: input, shape index: {}]   ;;  %s452_s6 = inlined_call_operand.vmem [shape: f32[1,16], index: 6, kind: input, shape index: {}]   ;;  %s453_s7 = inlined_call_operand.vmem [shape: f32[8,16], index: 7, kind: output, shape index: {}]  }
   0x1   :  { %336 = vmatprep.subr.bf16.mxu0 %v354_v0  ;;  %v27_v1 = vld [vmem:[%s446_s1] sm:$0xff]  ;;  %v28_v2 = vld [vmem:[%s446_s1 + $0x8] sm:$0xff]  ;;  %311 = vmatprep.mubr.msk.f32.mxu0 %vm355_vm0, %v356_v3  ;;  %v114_v9 = vld [vmem:[%s448_s3 + $0x10] sm:$0xff]  ;;  %vm123_vm2 = vcmask 261120  }
   0x2   :  { %v337_v4 = vpack.c.bf16 %v28_v2, %v27_v1  ;;  %339 = vmatprep.subr.bf16.mxu1 %v354_v0  ;;  %322 = vmatprep.mubr.msk.f32.mxu1 %vm355_vm0, %v356_v3  ;;  %v26_v5 = vld [vmem:[%s447_s0] sm:$0xff]  ;;  %v113_v7 = vld [vmem:[%s448_s3 + $0x8] sm:$0xff]  ;;  %v115_v10 = vld [vmem:[%s448_s3 + $0x18] sm:$0xff] }
   0x3   :  { %v112_v6 = vld [vmem:[%s448_s3] sm:$0xff]  ;;  %v343_v11 = vpack.c.bf16 %v115_v10, %v114_v9  ;;  %v200_v19 = vld [vmem:[%s450_s5 + $0x8] sm:$0xff]  ;;  %v201_v21 = vld [vmem:[%s450_s5 + $0x10] sm:$0xff] }
   0x4   :  { %338 = vmatpush3.bf16.msra.mxu0 %v337_v4  ;;  %v340_v8 = vpack.c.bf16 %v113_v7, %v112_v6  ;;  %v288_v12 = vld [vmem:[%s449_s2] ss:$0 sm:$0xff]  ;;  %v202_v22 = vld [vmem:[%s450_s5 + $0x18] sm:$0xff] }
   0x5   :  { %345 = vmatprep.subr.bf16.mxu0 %v354_v0  ;;  %v199_v18 = vld [vmem:[%s450_s5] sm:$0xff]  ;;  %v349_v23 = vpack.c.bf16 %v202_v22, %v201_v21 }
   0x6   :  { %341 = vmatpush3.bf16.msra.mxu1 %v340_v8  ;;  %v346_v20 = vpack.c.bf16 %v200_v19, %v199_v18  ;;  %v290_v24 = vld [vmem:[%s451_s4] ss:$0 sm:$0xff] }
   0x7   :  { %312 = vmatmul.mubr.msk.f32.vlgmr.msra.gmra.mrb[0].mxu0 %vm36_vm1, %v26_v5  ;;  %342 = vmatprep.subr.bf16.mxu1 %v354_v0  ;;  %v292_v30 = vld [vmem:[%s452_s6] ss:$0 sm:$0xff] }
   0x8   :  { %333 = vmatprep.mubr.msk.f32.mxu0 %vm355_vm0, %v356_v3  ;;  %347 = vmatpush3.bf16.msra.mxu0 %v346_v20 }
   0x9   :  { %348 = vmatprep.subr.bf16.mxu0 %v354_v0 }
   0xa   :  { %344 = vmatpush3.bf16.msra.mxu1 %v343_v11 }
   0xc   :  { %350 = vmatpush3.bf16.msra.mxu0 %v349_v23 }
  0xda   :  { %v106_v13 = vpop.f32.mrb[0].mxu0 }
  0xdb   :  { %v107_v14 = vadd.f32 %v288_v12, %v106_v13  ;;  %v313_v15 = vpop.f32.mrb[1].mxu0 }
  0xdd   :  { %v110_v16 = vmul.f32 0.2, %v107_v14 }
  0xdf   :  { %v111_v17 = vmax.f32 %v107_v14, %v110_v16 }
  0xe1   :  { %323 = vmatmul.mubr.msk.f32.vlgmr.msra.gmra.mrb[0].mxu1 %vm123_vm2, %v111_v17 }
 0x1b4   :  { %v193_v25 = vpop.f32.mrb[0].mxu1 }
 0x1b5   :  { %v194_v26 = vadd.f32 %v290_v24, %v193_v25  ;;  %v324_v27 = vpop.f32.mrb[1].mxu1 }
 0x1b7   :  { %v197_v28 = vmul.f32 0.2, %v194_v26 }
 0x1b9   :  { %v198_v29 = vmax.f32 %v194_v26, %v197_v28 }
 0x1bb   :  { %334 = vmatmul.mubr.msk.f32.vlgmr.msra.gmra.mrb[2].mxu0 %vm123_vm2, %v198_v29 }
 0x28e   :  { %v279_v31 = vpop.f32.mrb[2].mxu0 }
 0x28f   :  { %v280_v32 = vadd.f32 %v292_v30, %v279_v31  ;;  %v335_v33 = vpop.f32.mrb[3].mxu0 }
 0x291   :  { %283 = vst.msk [vmem:[%s453_s7] sm:$0xff] %vm36_vm1, %v280_v32 }

</bundles_post_ra>
